<compile_context>
chip_gen: v5e
topology: v5e:2x2
jax: 0.10.0
libtpu: 0.0.40
codegen_flags: <defaults>
</compile_context>

<pallas_src>
import functools

import jax
import jax.numpy as jnp
from jax.experimental import pallas as pl
from jax.experimental.pallas import tpu as pltpu

GROUP_SIZE = 1
TEMPERATURE = 1.0

_MAX_TM = 8192          # rows; the VMEM budget is the real limiter for big L
_F32_TEMP_TILES = 4     # full-tile f32 intermediates the body materializes


def _round_up(x, m):
    return ((x + m - 1) // m) * m


def _cdiv(a, b):
    return -(-a // b)


def _vmem_budgets():
    """Return (tile_budget_bytes, vmem_limit_bytes), sized per TPU generation."""
    cap = 64 * 1024 * 1024            # conservative default (v7x-sized VMEM)
    try:
        info = pltpu.get_tpu_info()
        cap_attr = getattr(info, "vmem_capacity_bytes", None)
        if cap_attr:
            cap = int(cap_attr)
    except Exception:
        pass
    # ~3/4 of physical VMEM for this kernel (96 MiB on v5e/v6e, 48 MiB on
    # v7x), and ~85% of that for the tiles we explicitly size (headroom for
    # compiler scratch / pipeline bookkeeping).
    vmem_limit = min((cap * 3) // 4, 96 * 1024 * 1024)
    tile_budget = (vmem_limit * 17) // 20
    return tile_budget, vmem_limit


def _tile_bytes_per_row(length, itemsizes):
    # 2 pipeline buffers per input (at the input dtype) + f32 elementwise
    # temporaries materialized by the body.
    return length * (2 * sum(itemsizes) + _F32_TEMP_TILES * 4)


def _choose_tm(n_rows, length, itemsizes, tile_budget):
    """Largest row tile that fits the VMEM budget, >=2 grid tiles if possible."""
    min_itemsize = min(itemsizes)
    row_multiple = max(8, 32 // min_itemsize)      # f32: 8, bf16: 16, int8: 32
    bytes_per_row = _tile_bytes_per_row(length, itemsizes)
    tm = (tile_budget // max(bytes_per_row, 1)) // row_multiple * row_multiple
    tm = max(row_multiple, min(tm, _MAX_TM))
    # Keep at least 2 grid tiles when N allows it so both v7x TensorCores
    # receive work under dimension_semantics=("parallel",).
    two_way = _round_up(_cdiv(n_rows, 2), row_multiple)
    tm = min(tm, max(two_way, row_multiple))
    tm = min(tm, _round_up(n_rows, row_multiple))
    return tm


def _kd_kernel(ps_ref, pt_ref, out_ref, *, inv_t, n_rows, tm):
    """KL(softmax(teacher) || log_softmax(student)) summed over one (TM, L) tile.

    ps_ref : (TM, L) student logits tile (input dtype)
    pt_ref : (TM, L) teacher logits tile (input dtype)
    out_ref: (1, 1)  SMEM per-tile partial sum (one distinct block per step)
    """
    x = ps_ref[...].astype(jnp.float32)   # student
    y = pt_ref[...].astype(jnp.float32)   # teacher
    if inv_t != 1.0:                      # compile-time constant; skipped at T == 1
        x = x * inv_t
        y = y * inv_t

    # student log-softmax pieces (numerically stable)
    x_max = jnp.max(x, axis=-1, keepdims=True)
    xs = x - x_max
    lse_x = jnp.log(jnp.sum(jnp.exp(xs), axis=-1, keepdims=True))

    # teacher softmax pieces
    y_max = jnp.max(y, axis=-1, keepdims=True)
    ys = y - y_max
    ey = jnp.exp(ys)
    sy = jnp.sum(ey, axis=-1, keepdims=True)

    # KL_row = sum_j p_t_j * (log p_t_j - log p_s_j)
    #        = (1/sy) * sum_j ey_j * (ys_j - xs_j) + (lse_x - log sy)
    # row_shift is hoisted out of the per-element product (VALU relief), and
    # the teacher-softmax divide happens once per row, not per element.
    inner = jnp.sum(ey * (ys - xs), axis=-1, keepdims=True)     # (TM, 1)
    kl_rows = inner / sy + (lse_x - jnp.log(sy))                # (TM, 1)

    if n_rows % tm != 0:
        # Ragged last tile: rows past n_rows contain unspecified DMA data.
        # Each row's math is independent, so masking the per-row KL suffices.
        i = pl.program_id(0)
        row = jax.lax.broadcasted_iota(jnp.int32, (tm, 1), 0)
        kl_rows = jnp.where(row < (n_rows - i * tm), kl_rows, 0.0)

    out_ref[0, 0] = jnp.sum(kl_rows)


def _kl_pair_sum(ps, pt, tm, inv_t, tile_budget, vmem_limit):
    """Total KL sum over all rows of one (N, L) student/teacher logit pair."""
    n, length = ps.shape
    num_tiles = _cdiv(n, tm)
    itemsizes = (jnp.dtype(ps.dtype).itemsize, jnp.dtype(pt.dtype).itemsize)

    spec_kwargs = {}
    if tm * _tile_bytes_per_row(length, itemsizes) > tile_budget:
        # Rows too long to double-buffer even at the minimum row tile: halve
        # the input footprint by single-buffering the input DMAs.
        # TODO(synk): replace with an L-tiled two-pass softmax path.
        spec_kwargs = dict(pipeline_mode=pl.Buffered(1))

    def make_in_spec():
        return pl.BlockSpec((tm, length), lambda i: (i, 0), **spec_kwargs)

    kernel = functools.partial(_kd_kernel, inv_t=inv_t, n_rows=n, tm=tm)
    partials = pl.pallas_call(
        kernel,
        out_shape=jax.ShapeDtypeStruct((num_tiles, 1), jnp.float32),
        grid_spec=pltpu.PrefetchScalarGridSpec(
            num_scalar_prefetch=0,
            grid=(num_tiles,),
            in_specs=[make_in_spec(), make_in_spec()],
            out_specs=pl.BlockSpec((1, 1), lambda i: (i, 0),
                                   memory_space=pltpu.SMEM),
        ),
        compiler_params=pltpu.CompilerParams(
            dimension_semantics=("parallel",),
            vmem_limit_bytes=vmem_limit,
        ),
    )(ps, pt)
    return jnp.sum(partials)


def msc_kd_loss(inputs, targets, *, temperature=TEMPERATURE,
                group_size=GROUP_SIZE):
    """Forward pass of MscKDLoss. Accepts a single array or a tuple/list."""
    if not isinstance(inputs, (tuple, list)):
        inputs = (inputs,)
        targets = (targets,)
    n_pairs = len(inputs)
    inv_t = 1.0 / float(temperature)
    tile_budget, vmem_limit = _vmem_budgets()

    # TODO(synk): for scales where L is not a multiple of 128 (e.g. 8x8 maps),
    #             lane utilization drops; with group_size > 1 the reshape could
    #             pack the softmax axis lane-dense — not applicable at
    #             group_size == 1 without changing semantics.
    total = None
    for item, item_target in zip(inputs, targets):
        b, c, h, w = item.shape
        n_rows = b * (c // group_size)
        length = group_size * h * w
        ps = item.reshape(n_rows, length)            # dtype preserved
        pt = item_target.reshape(n_rows, length)     # dtype preserved
        itemsizes = (jnp.dtype(ps.dtype).itemsize,
                     jnp.dtype(pt.dtype).itemsize)
        tm = _choose_tm(n_rows, length, itemsizes, tile_budget)
        pair_sum = _kl_pair_sum(ps, pt, tm, inv_t, tile_budget, vmem_limit)
        # KLDivLoss(reduction='sum') / (numel / last_dim) == KLD(sum) / N
        pair_loss = pair_sum / jnp.float32(n_rows)
        total = pair_loss if total is None else total + pair_loss
    return total / jnp.float32(n_pairs)


def _ref_loss(inputs, targets, temperature=TEMPERATURE, group_size=GROUP_SIZE):
    """Pure-JAX reference matching the PyTorch module."""
    if not isinstance(inputs, (tuple, list)):
        inputs = (inputs,)
        targets = (targets,)
    total = jnp.float32(0.0)
    for item, item_target in zip(inputs, targets):
        b, c, h, w = item.shape
        ps = item.reshape(b * (c // group_size), -1).astype(jnp.float32)
        pt = item_target.reshape(b * (c // group_size), -1).astype(jnp.float32)
        log_p_s = jax.nn.log_softmax(ps / temperature, axis=-1)
        p_t = jax.nn.softmax(pt / temperature, axis=-1)
        total = total + jnp.sum(p_t * (jnp.log(p_t) - log_p_s)) / ps.shape[0]
    return total / len(inputs)


if __name__ == "__main__":
    key = jax.random.PRNGKey(0)
    k1, k2, k3, k4, k5, k6, k7, k8 = jax.random.split(key, 8)

    # 1) single NCHW pair at small shapes (matches the module's typical use)
    B, C, H, W = 2, 4, 16, 16
    pred = jax.random.normal(k1, (B, C, H, W), dtype=jnp.float32)
    soft = jax.random.normal(k2, (B, C, H, W), dtype=jnp.float32)
    loss = msc_kd_loss(pred, soft)
    jax.block_until_ready(loss)
    ref = _ref_loss(pred, soft)
    assert jnp.allclose(loss, ref, rtol=1e-4, atol=1e-5), (loss, ref)

    # 2) multi-scale tuple with a row count that is NOT a multiple of the tile
    #    (exercises the in-kernel ragged-tile masking and >=2-tile grids).
    preds = (
        jax.random.normal(k3, (3, 4, 16, 16), dtype=jnp.float32),
        jax.random.normal(k4, (3, 4, 8, 8), dtype=jnp.float32),
    )
    softs = (
        jax.random.normal(k5, (3, 4, 16, 16), dtype=jnp.float32),
        jax.random.normal(k6, (3, 4, 8, 8), dtype=jnp.float32),
    )
    loss2 = msc_kd_loss(preds, softs)
    jax.block_until_ready(loss2)
    ref2 = _ref_loss(preds, softs)
    assert jnp.allclose(loss2, ref2, rtol=1e-4, atol=1e-5), (loss2, ref2)

    # 3) bf16 inputs with temperature != 1 (dtype preserved through the DMA,
    #    f32 compute in-kernel, compile-time inv_t multiply path).
    pred_bf = jax.random.normal(k7, (2, 4, 16, 16), dtype=jnp.bfloat16)
    soft_bf = jax.random.normal(k8, (2, 4, 16, 16), dtype=jnp.bfloat16)
    loss3 = msc_kd_loss(pred_bf, soft_bf, temperature=2.0)
    jax.block_until_ready(loss3)
    ref3 = _ref_loss(pred_bf, soft_bf, temperature=2.0)
    assert jnp.allclose(loss3, ref3, rtol=1e-4, atol=1e-5), (loss3, ref3)

    print("KERNEL_OK")
</pallas_src>

<mosaic_0001>
module attributes {stable_mosaic.version = 11 : i64} {
  func.func @_kd_kernel(%arg0: i32, %arg1: memref<8x256xf32, #tpu.memory_space<vmem>>, %arg2: memref<8x256xf32, #tpu.memory_space<vmem>>, %arg3: memref<1x1xf32, #tpu.memory_space<smem>>) attributes {dimension_semantics = [#tpu.dimension_semantics<parallel>], iteration_bounds = array<i64: 1>, scalar_prefetch = 0 : i64, scratch_operands = 0 : i64, tpu.core_type = #tpu.core_type<tc>, window_params = [{transform_indices = @transform_0, window_bounds = array<i64: 8, 256>}, {transform_indices = @transform_1, window_bounds = array<i64: 8, 256>}, {transform_indices = @transform_2, window_bounds = array<i64: 1, 1>}]} {
    %c0 = arith.constant 0 : index
    %c0_0 = arith.constant 0 : index
    %0 = vector.load %arg1[%c0, %c0_0] : memref<8x256xf32, #tpu.memory_space<vmem>>, vector<8x256xf32>
    %c0_1 = arith.constant 0 : index
    %c0_2 = arith.constant 0 : index
    %1 = vector.load %arg2[%c0_1, %c0_2] : memref<8x256xf32, #tpu.memory_space<vmem>>, vector<8x256xf32>
    %cst = arith.constant dense<0xFF800000> : vector<8xf32>
    %2 = vector.multi_reduction <maximumf>, %0, %cst [1] : vector<8x256xf32> to vector<8xf32>
    %3 = vector.shape_cast %2 : vector<8xf32> to vector<8x1xf32>
    %4 = vector.broadcast %3 : vector<8x1xf32> to vector<8x256xf32>
    %5 = arith.subf %0, %4 : vector<8x256xf32>
    %6 = math.exp %5 : vector<8x256xf32>
    %cst_3 = arith.constant dense<0.000000e+00> : vector<8xf32>
    %7 = vector.multi_reduction <add>, %6, %cst_3 [1] : vector<8x256xf32> to vector<8xf32>
    %8 = vector.shape_cast %7 : vector<8xf32> to vector<8x1xf32>
    %9 = math.log %8 : vector<8x1xf32>
    %cst_4 = arith.constant dense<0xFF800000> : vector<8xf32>
    %10 = vector.multi_reduction <maximumf>, %1, %cst_4 [1] : vector<8x256xf32> to vector<8xf32>
    %11 = vector.shape_cast %10 : vector<8xf32> to vector<8x1xf32>
    %12 = vector.broadcast %11 : vector<8x1xf32> to vector<8x256xf32>
    %13 = arith.subf %1, %12 : vector<8x256xf32>
    %14 = math.exp %13 : vector<8x256xf32>
    %cst_5 = arith.constant dense<0.000000e+00> : vector<8xf32>
    %15 = vector.multi_reduction <add>, %14, %cst_5 [1] : vector<8x256xf32> to vector<8xf32>
    %16 = vector.shape_cast %15 : vector<8xf32> to vector<8x1xf32>
    %17 = arith.subf %13, %5 : vector<8x256xf32>
    %18 = arith.mulf %14, %17 : vector<8x256xf32>
    %cst_6 = arith.constant dense<0.000000e+00> : vector<8xf32>
    %19 = vector.multi_reduction <add>, %18, %cst_6 [1] : vector<8x256xf32> to vector<8xf32>
    %20 = vector.shape_cast %19 : vector<8xf32> to vector<8x1xf32>
    %21 = arith.divf %20, %16 : vector<8x1xf32>
    %22 = math.log %16 : vector<8x1xf32>
    %23 = arith.subf %9, %22 : vector<8x1xf32>
    %24 = arith.addf %21, %23 : vector<8x1xf32>
    %25 = vector.shape_cast %24 : vector<8x1xf32> to vector<1x8x1xf32>
    %cst_7 = arith.constant dense<0.000000e+00> : vector<1xf32>
    %26 = vector.multi_reduction <add>, %25, %cst_7 [1, 2] : vector<1x8x1xf32> to vector<1xf32>
    %27 = vector.shape_cast %26 : vector<1xf32> to vector<1x1x1xf32>
    %28 = vector.extract %27[0, 0, 0] : f32 from vector<1x1x1xf32>
    %c0_8 = arith.constant 0 : index
    %c0_9 = arith.constant 0 : index
    %29 = memref.load %arg3[%c0_8, %c0_9] : memref<1x1xf32, #tpu.memory_space<smem>>
    memref.store %28, %arg3[%c0_8, %c0_9] : memref<1x1xf32, #tpu.memory_space<smem>>
    return
  }
  func.func @transform_0(%arg0: i32) -> (i32, i32) {
    %c0_i32 = arith.constant 0 : i32
    %c0_i32_0 = arith.constant 0 : i32
    return %arg0, %c0_i32 : i32, i32
  }
  func.func @transform_1(%arg0: i32) -> (i32, i32) {
    %c0_i32 = arith.constant 0 : i32
    %c0_i32_0 = arith.constant 0 : i32
    return %arg0, %c0_i32 : i32, i32
  }
  func.func @transform_2(%arg0: i32) -> (i32, i32) {
    %c0_i32 = arith.constant 0 : i32
    %c0_i32_0 = arith.constant 0 : i32
    return %arg0, %c0_i32 : i32, i32
  }
}

</mosaic_0001>

<bundles_post_ra>
// kernel: tpu_custom_call.1
= control target key start
LH: loop header
LB: loop body
LE: loop exit
PB: predicated region body
PF: predicated region fallthrough
CT: control target
= control target key end

     0   :  { %7 = vsyncpa [#allocation3], 0  ;;  %s238_s0 = inlined_call_operand.hbm [shape: f32[8,256], index: 0, kind: input, shape index: {}]   ;;  %s239_s1 = inlined_call_operand.hbm [shape: f32[8,256], index: 1, kind: input, shape index: {}]   ;;  %s240_s2 = inlined_call_operand.hbm [shape: f32[1,1], index: 2, kind: output, shape index: {}]  }
   0x1   :  { %8 = vsyncpa [#allocation6], 0 }
   0x2   :  { %9 = vsyncpa [#allocation4], 0  ;;  %s15_s11 = sshll.u32 %s238_s0, 4  ;;  %s211_s12 = smov [#allocation2]   ;;  %s16_s11 = int_to_ptr.hbm [resolvable:$true] %s15_s11 }
   0x3   :  { %s17_s13 = sshll.u32 %s211_s12, 4  ;;  %s26_s16 = sshll.u32 %s239_s1, 4  ;;  %s18_s13 = int_to_ptr.vmem [resolvable:$true] %s17_s13  ;;  %s27_s16 = int_to_ptr.hbm [resolvable:$true] %s26_s16 }
   0x4   :  { %20 = dma.hbm_to_vmem [thread:$0]  %s16_s11, 256, %s18_s13, [#allocation3]  }
   0x5   :  { %s212_s17 = smov [#allocation5]  }
   0x6   :  { %s28_s18 = sshll.u32 %s212_s17, 4  ;;  %s29_s18 = int_to_ptr.vmem [resolvable:$true] %s28_s18 }
   0x7   :  { %31 = dma.hbm_to_vmem [thread:$0]  %s27_s16, 256, %s29_s18, [#allocation6]  }
   0x8   :  { %205 = dma.done.wait [#allocation3], 256  }
   0x9   :  { %206 = vsyncadd [#allocation3], 4294967040 }
   0xa   :  { %207 = dma.done.wait [#allocation6], 256  }
   0xb   :  { %208 = vsyncadd [#allocation6], 4294967040  ;;  %v42_v0 = vld [vmem:[#allocation5] sm:$0xff]  ;;  %v43_v1 = vld [vmem:[#allocation5 + $0x8] sm:$0xff]  ;;  %vm96_vm4 = vcmask 7168   ;;  %s114_s19 = sshll.u32 %s240_s2, 4  ;;  %s115_s19 = int_to_ptr.hbm [resolvable:$true] %s114_s19 }
   0xc   :  { %v58_v2 = vmax.f32 %v42_v0, %v43_v1  ;;  %v40_v3 = vld [vmem:[#allocation2] sm:$0xff]  ;;  %v41_v4 = vld [vmem:[#allocation2 + $0x8] sm:$0xff]  ;;  %s213_s21 = smov [#allocation7]  }
   0xd   :  { %v44_v5 = vmax.f32 %v40_v3, %v41_v4 }
   0xe   :  { %59 = vmax.xlane.f32.xlu0 %v58_v2 }
  0x16   :  { %45 = vmax.xlane.f32.xlu0 %v44_v5 }
  0x81   :  { %v60_v6 = vpop.xlane.xlu0 %59 }
  0x82   :  { %v61_v7 = vsub.f32 %v42_v0, %v60_v6  ;;  %v62_v8 = vsub.f32 %v43_v1, %v60_v6 }
  0x84   :  { %v63_v9 = vmul.f32 1.442695, %v61_v7  ;;  %v65_v10 = vmul.f32 1.442695, %v62_v8 }
  0x86   :  { %131 = vpow2.f32 %v63_v9 }
  0x87   :  { %133 = vpow2.f32 %v65_v10 }
  0x89   :  { %v46_v11 = vpop.xlane.xlu0 %45 }
  0x8a   :  { %v47_v12 = vsub.f32 %v40_v3, %v46_v11  ;;  %v48_v13 = vsub.f32 %v41_v4, %v46_v11 }
  0x8c   :  { %v132_v14 = vpop.eup %131  ;;  %v49_v15 = vmul.f32 1.442695, %v47_v12  ;;  %v51_v16 = vmul.f32 1.442695, %v48_v13  ;;  %v70_v17 = vsub.f32 %v61_v7, %v47_v12  ;;  %v71_v18 = vsub.f32 %v62_v8, %v48_v13 }
  0x8d   :  { %v134_v19 = vpop.eup %133 }
  0x8e   :  { %135 = vpow2.f32 %v49_v15  ;;  %v67_v20 = vadd.f32 %v134_v19, %v132_v14  ;;  %v72_v21 = vmul.f32 %v132_v14, %v70_v17  ;;  %v73_v22 = vmul.f32 %v134_v19, %v71_v18 }
  0x8f   :  { %137 = vpow2.f32 %v51_v16 }
  0x90   :  { %68 = vadd.xlane.f32.xlu1 %v67_v20  ;;  %v74_v23 = vadd.f32 %v73_v22, %v72_v21 }
  0x92   :  { %75 = vadd.xlane.f32.xlu2 %v74_v23 }
  0x94   :  { %v136_v24 = vpop.eup %135 }
  0x95   :  { %v138_v25 = vpop.eup %137 }
  0x96   :  { %v53_v26 = vadd.f32 %v138_v25, %v136_v24 }
  0x98   :  { %54 = vadd.xlane.f32.xlu1 %v53_v26 }
 0x103   :  { %v69_v27 = vpop.xlane.xlu1 %68 }
 0x104   :  { %139 = vrcp.f32 %v69_v27  ;;  %v88_v32 = vand.u32 2147483648, %v69_v27  ;;  %v86_v34 = vand.u32 2147483647, %v69_v27  ;;  %vm82_vm1 = vweird.f32 %v69_v27 }
 0x105   :  { %141 = vlog2.f32 %v69_v27  ;;  %v76_v43 = vpop.xlane.xlu2 %75 }
 0x106   :  { %v89_v38 = vor.u32 1.1754944e-38, %v88_v32  ;;  %vm87_vm3 = vcmp.eq.f32.partialorder %v86_v34, 8.507059e+37 }
 0x10a   :  { %v140_v28 = vpop.eup %139 }
 0x10b   :  { %v78_v29 = vmul.f32 %v140_v28, %v69_v27  ;;  %v55_v30 = vpop.xlane.xlu1 %54  ;;  %vm83_vm0 = vweird.f32 %v140_v28  ;;  %v142_v35 = vpop.eup %141 }
 0x10c   :  { %143 = vlog2.f32 %v55_v30  ;;  %vm84_vm2 = vmor %vm82_vm1, %vm83_vm0  ;;  %v93_v40 = vmul.f32 0.6931472, %v142_v35 }
 0x10d   :  { %v79_v31 = vsub.f32 1.0, %v78_v29 }
 0x10f   :  { %v80_v33 = vmul.f32 %v140_v28, %v79_v31 }
 0x111   :  { %v81_v36 = vadd.f32 %v140_v28, %v80_v33 }
 0x112   :  { %v144_v37 = vpop.eup %143 }
 0x113   :  { %v85_v39 = vsel %vm84_vm2, %v140_v28, %v81_v36  ;;  %v57_v41 = vmul.f32 0.6931472, %v144_v37 }
 0x114   :  { %v90_v42 = vsel %vm87_vm3, %v89_v38, %v85_v39 }
 0x115   :  { %v91_v44 = vmul.f32 %v90_v42, %v76_v43  ;;  %v94_v45 = vsub.f32 %v57_v41, %v93_v40 }
 0x117   :  { %v95_v46 = vadd.f32 %v94_v45, %v91_v44 }
 0x119   :  { %v97_v47 = vsel %vm96_vm4, %v95_v46, 0.0 }
 0x11a   :  { %98 = vadd.xlane.f32.xlu2 %v97_v47 }
 0x18d   :  { %v99_v48 = vpop.xlane.xlu2 %98 }
 0x18e   :  { %v100_v49 = vrot.slane %v99_v48, 4 }
 0x190   :  { %v101_v50 = vadd.f32 %v100_v49, %v99_v48 }
 0x192   :  { %v102_v51 = vrot.slane %v101_v50, 2 }
 0x194   :  { %v103_v52 = vadd.f32 %v102_v51, %v101_v50 }
 0x196   :  { %v104_v53 = vrot.slane %v103_v52, 1 }
 0x198   :  { %v105_v54 = vadd.f32 %v104_v53, %v103_v52 }
 0x19a   :  { %126 = vpush %v105_v54 }
 0x1cb   :  { %s127_s20 = spop %126 }
 0x1cc   :  { %108 = sst [smem:[#allocation7]] %s127_s20 }
 0x1cd   :  { %117 = dma.smem_to_hbm %s213_s21, 16, %s115_s19, [#allocation4]  }
 0x1ce   :  { %209 = dma.done.wait [#allocation4], 16  }
 0x1cf   :  { %210 = vsyncadd [#allocation4], 4294967280 }
 0x1d0   :  { %122 = sfence }
 0x1d1   :  { %123 = vsyncpa [#allocation3], 1 }
 0x1d2   :  { %124 = vsyncpa [#allocation6], 1 }
 0x1d3   :  { %125 = vsyncpa [#allocation4], 1 }

</bundles_post_ra>
